<compile_context>
chip_gen: v6e
topology: v6e:2x2x1
jax: 0.10.0
libtpu: 0.0.40
codegen_flags: <defaults>
</compile_context>

<pallas_src>
import functools

import jax
import jax.numpy as jnp
from jax import lax
from jax.experimental import pallas as pl
from jax.experimental.pallas import tpu as pltpu


def _round_up(x, m):
    return ((x + m - 1) // m) * m


def _transfer(v, rn_unit):
    # v - <rn, v> rn   (project onto the relation hyperplane)
    return v - jnp.sum(rn_unit * v, axis=-1, keepdims=True) * rn_unit


def _transh_kernel(h_ref, t_ref, nt_ref, r_ref, rn_ref,
                   rel_ref, nrm_ref, seg_ref, ent_ref,
                   out_ref, acc_ref,
                   *, margin, C, eps2, inv_B, inv_R, ent_scale,
                   tiles_per_split, tile_rows, valid_packed_rows):
    c = pl.program_id(0)   # core-split axis ("parallel")
    e = pl.program_id(1)   # entity-tile axis ("arbitrary", reduction)

    # ---- reset the per-split VMEM accumulator at the start of each split ----
    @pl.when(e == 0)
    def _():
        acc_ref[...] = jnp.zeros_like(acc_ref)

    # ---- batch margin loss + relation orthogonality: run exactly once ----
    @pl.when((c == 0) & (e == 0))
    def _():
        h = h_ref[...]          # (B, D)
        t = t_ref[...]          # (B, D)
        nt = nt_ref[...]        # (B, D) negative tails
        r = r_ref[...]          # (B, D)
        rn = rn_ref[...]        # (B, D) per-example hyperplane normals

        # F.normalize(norm, 2, dim=-1): x / max(||x||, 1e-12)  (via EUP rsqrt)
        rn_u = rn * lax.rsqrt(
            jnp.maximum(jnp.sum(rn * rn, axis=-1, keepdims=True), 1e-24))

        h_v = _transfer(h, rn_u)
        t_v = _transfer(t, rn_u)
        nt_v = _transfer(nt, rn_u)

        d_pos = h_v + r - t_v
        d_neg = h_v + r - nt_v
        score = jnp.sqrt(jnp.sum(d_pos * d_pos, axis=-1, keepdims=True))
        nscore = jnp.sqrt(jnp.sum(d_neg * d_neg, axis=-1, keepdims=True))
        margin_loss = jnp.sum(jnp.maximum(score - nscore + margin, 0.0)) * inv_B

        # orth regularizer (matches reference): relu(<r, w_r>/||r|| - eps^2).mean()
        rel = rel_ref[...]      # (R, D)
        nrm = nrm_ref[...]      # (R, D)
        rel_inv = lax.rsqrt(
            jnp.maximum(jnp.sum(rel * rel, axis=-1, keepdims=True), 1e-24))
        orth = jnp.maximum(
            jnp.sum(rel * nrm, axis=-1, keepdims=True) * rel_inv - eps2, 0.0)
        orth_loss = jnp.sum(orth) * inv_R

        acc_ref[...] += margin_loss + C * orth_loss

    # ---- streamed entity-norm regularizer tile: relu(||e|| - 1) ----
    # ent tile is lane-packed: (TE, pack*D), `pack` real rows per packed row.
    # Rows past the end of the real table (ragged last tile / clamped excess
    # tiles) are zeroed here, so they contribute relu(0 - 1) = 0.
    tile_idx = c * tiles_per_split + e
    row0 = tile_idx * tile_rows
    row_ids = row0 + lax.broadcasted_iota(jnp.int32, (tile_rows, 1), 0)
    valid = row_ids < valid_packed_rows
    ent = jnp.where(valid, ent_ref[...], 0.0)

    # per-real-row sum of squares via a (pack*D, pack) 0/1 bf16 segment matrix
    # on the otherwise-idle MXU (single-pass bf16, f32 accumulate).
    sq = (ent * ent).astype(jnp.bfloat16)
    rowsq = jnp.dot(sq, seg_ref[...], preferred_element_type=jnp.float32)
    # reference uses ||e|| (not ||e||^2), so keep the sqrt.
    tile_sum = jnp.sum(jnp.maximum(jnp.sqrt(rowsq) - 1.0, 0.0))
    acc_ref[...] += ent_scale * tile_sum       # ent_scale = C / E (mean folded in)

    # ---- writeback of this split's partial, once, at the last tile ----
    @pl.when(e == pl.num_programs(1) - 1)
    def _():
        out_ref[0, 0] = jnp.sum(acc_ref[...])


@functools.partial(jax.jit,
                   static_argnames=("margin", "C", "eps",
                                    "tile_bytes", "num_core_splits"))
def transh_forward(h_idx, r_idx, t_idx, neg_t_idx,
                   ent_tab, rel_tab, nrm_tab,
                   margin=1.0, C=1.0, eps=1e-3,
                   tile_bytes=8 * 1024 * 1024, num_core_splits=None):
    """Returns the scalar TransH training loss: margin + C*(entity + orth)."""
    B = h_idx.shape[0]
    E, D = ent_tab.shape
    R = rel_tab.shape[0]

    # Embedding lookups (glue). The PyTorch word2idx remap is the identity here.
    # TODO(synk): fuse these gathers into the kernel via
    # PrefetchScalarGridSpec scalar-prefetched indices + pl.Element row gather.
    h = jnp.take(ent_tab, h_idx, axis=0)
    t = jnp.take(ent_tab, t_idx, axis=0)
    nt = jnp.take(ent_tab, neg_t_idx, axis=0)
    r = jnp.take(rel_tab, r_idx, axis=0)
    rn = jnp.take(nrm_tab, r_idx, axis=0)

    # ---- lane packing for the entity streaming pass (no HBM pad/copy) ----
    if D < 128 and 128 % D == 0 and E % (128 // D) == 0:
        pack = 128 // D            # e.g. D=32 -> 4 rows per 128-lane vreg
    else:
        # TODO(synk): E not a multiple of the pack factor -> stream unpacked
        # (lane-sparse) rather than materializing a padded copy of the table.
        pack = 1
    Dp = pack * D
    packed_rows = E // pack        # exact: pack > 1 only when E % pack == 0
    ent_view = ent_tab.reshape(packed_rows, Dp) if pack > 1 else ent_tab

    # ---- tile sizing: ~tile_bytes per buffer, balanced across core splits ----
    bytes_per_packed_row = Dp * ent_tab.dtype.itemsize
    max_rows = max(8, (tile_bytes // bytes_per_packed_row) // 8 * 8)
    tiles_needed = -(-packed_rows // max_rows)

    if num_core_splits is None:
        # Only split the streaming axis when there is enough work; the
        # "parallel" axis is harmless on single-core chips (v5e/v6e) since the
        # tile size below is re-derived from the split tile count (balanced).
        num_core_splits = 2 if tiles_needed >= 2 else 1
    tiles_per_split = -(-tiles_needed // num_core_splits)
    total_tiles = num_core_splits * tiles_per_split
    TE = min(_round_up(-(-packed_rows // total_tiles), 8), max_rows)
    last_block = max(0, -(-packed_rows // TE) - 1)   # last real block index

    # Segment matrix: column k sums the D lanes of packed sub-row k (bf16 ->
    # single-pass MXU matmul; entries are exactly 0/1 so bf16 is exact).
    seg = jnp.zeros((Dp, pack), jnp.bfloat16).at[
        jnp.arange(Dp), jnp.arange(Dp) // D].set(1.0)

    kernel = functools.partial(
        _transh_kernel,
        margin=float(margin), C=float(C), eps2=float(eps) ** 2,
        inv_B=1.0 / B, inv_R=1.0 / R, ent_scale=float(C) / E,
        tiles_per_split=int(tiles_per_split), tile_rows=int(TE),
        valid_packed_rows=int(packed_rows))

    batch_spec = pl.BlockSpec((B, D), lambda c, e: (0, 0))
    rel_spec = pl.BlockSpec((R, D), lambda c, e: (0, 0))
    seg_spec = pl.BlockSpec((Dp, pack), lambda c, e: (0, 0))
    # Clamp so excess / ragged tiles never start a DMA past the table; the
    # in-kernel row mask zeroes anything that is not a real entity row.
    ent_spec = pl.BlockSpec(
        (TE, Dp), lambda c, e: (jnp.minimum(c * tiles_per_split + e, last_block), 0))
    # One scalar partial per core-split.  (1,1) SMEM block pads to an 8x128
    # word slab; negligible at this size, and this layout is the proven one.
    out_spec = pl.BlockSpec((1, 1), lambda c, e: (c, 0),
                            memory_space=pltpu.MemorySpace.SMEM)

    cost = pl.CostEstimate(
        flops=int(3 * E * D + 2 * total_tiles * TE * Dp * pack
                  + 12 * B * D + 6 * R * D),
        transcendentals=int(total_tiles * TE * pack + 4 * B + R),
        bytes_accessed=int(E * D * 4 + 5 * B * D * 4 + 2 * R * D * 4
                           + Dp * pack * 2 + num_core_splits * 4),
    )

    partials = pl.pallas_call(
        kernel,
        out_shape=jax.ShapeDtypeStruct((num_core_splits, 1), jnp.float32),
        grid=(num_core_splits, tiles_per_split),
        in_specs=[batch_spec, batch_spec, batch_spec, batch_spec, batch_spec,
                  rel_spec, rel_spec, seg_spec, ent_spec],
        out_specs=out_spec,
        scratch_shapes=[pltpu.VMEM((1, 1), jnp.float32)],
        compiler_params=pltpu.CompilerParams(
            dimension_semantics=("parallel", "arbitrary"),
            vmem_limit_bytes=32 * 1024 * 1024),
        cost_estimate=cost,
    )(h, t, nt, r, rn, rel_tab, nrm_tab, seg, ent_view)

    return jnp.sum(partials)


if __name__ == "__main__":
    # Small synthetic TransH instance: 64 entities, 16 relations, emb_dim=32,
    # batch of 8 (head, relation, tail) triples.
    E, R, D, B = 64, 16, 32, 8
    key = jax.random.PRNGKey(0)
    k1, k2, k3, k4, k5, k6, k7 = jax.random.split(key, 7)

    # Deterministic xavier-normal init (std = sqrt(2/(fan_in+fan_out))).
    ent_tab = jax.random.normal(k1, (E, D), jnp.float32) * (2.0 / (E + D)) ** 0.5
    rel_tab = jax.random.normal(k2, (R, D), jnp.float32) * (2.0 / (R + D)) ** 0.5
    nrm_tab = jax.random.normal(k3, (R, D), jnp.float32) * (2.0 / (R + D)) ** 0.5
    # __init__ L2-normalizes the relation and hyperplane-normal tables.
    rel_tab = rel_tab / jnp.linalg.norm(rel_tab, axis=-1, keepdims=True)
    nrm_tab = nrm_tab / jnp.linalg.norm(nrm_tab, axis=-1, keepdims=True)

    h_idx = jax.random.randint(k4, (B,), 0, E, dtype=jnp.int32)
    r_idx = jax.random.randint(k5, (B,), 0, R, dtype=jnp.int32)
    t_idx = jax.random.randint(k6, (B,), 0, E, dtype=jnp.int32)
    # TODO(synk): reference uses host-side random.randint(1, E-1) inclusive;
    # negative sampling done with jax.random in the caller instead.
    neg_t_idx = jax.random.randint(k7, (B,), 1, E, dtype=jnp.int32)

    loss = transh_forward(h_idx, r_idx, t_idx, neg_t_idx,
                          ent_tab, rel_tab, nrm_tab,
                          margin=1.0, C=1.0, eps=1e-3)
    jax.block_until_ready(loss)
    assert loss.shape == () and jnp.isfinite(loss)
    print("KERNEL_OK")
</pallas_src>

<mosaic_0001>
module attributes {stable_mosaic.version = 11 : i64} {
  func.func @_transh_kernel(%arg0: i32, %arg1: i32, %arg2: memref<8x32xf32, #tpu.memory_space<vmem>>, %arg3: memref<8x32xf32, #tpu.memory_space<vmem>>, %arg4: memref<8x32xf32, #tpu.memory_space<vmem>>, %arg5: memref<8x32xf32, #tpu.memory_space<vmem>>, %arg6: memref<8x32xf32, #tpu.memory_space<vmem>>, %arg7: memref<16x32xf32, #tpu.memory_space<vmem>>, %arg8: memref<16x32xf32, #tpu.memory_space<vmem>>, %arg9: memref<128x4xbf16, #tpu.memory_space<vmem>>, %arg10: memref<16x128xf32, #tpu.memory_space<vmem>>, %arg11: memref<1x1xf32, #tpu.memory_space<smem>>, %arg12: memref<1x1xf32, #tpu.memory_space<vmem>>) attributes {dimension_semantics = [#tpu.dimension_semantics<parallel>, #tpu.dimension_semantics<arbitrary>], iteration_bounds = array<i64: 1, 1>, scalar_prefetch = 0 : i64, scratch_operands = 1 : i64, tpu.core_type = #tpu.core_type<tc>, window_params = [{pipeline_mode = #tpu.pipeline_mode<synchronous>, transform_indices = @transform_0, window_bounds = array<i64: 8, 32>}, {pipeline_mode = #tpu.pipeline_mode<synchronous>, transform_indices = @transform_1, window_bounds = array<i64: 8, 32>}, {pipeline_mode = #tpu.pipeline_mode<synchronous>, transform_indices = @transform_2, window_bounds = array<i64: 8, 32>}, {pipeline_mode = #tpu.pipeline_mode<synchronous>, transform_indices = @transform_3, window_bounds = array<i64: 8, 32>}, {pipeline_mode = #tpu.pipeline_mode<synchronous>, transform_indices = @transform_4, window_bounds = array<i64: 8, 32>}, {pipeline_mode = #tpu.pipeline_mode<synchronous>, transform_indices = @transform_5, window_bounds = array<i64: 16, 32>}, {pipeline_mode = #tpu.pipeline_mode<synchronous>, transform_indices = @transform_6, window_bounds = array<i64: 16, 32>}, {pipeline_mode = #tpu.pipeline_mode<synchronous>, transform_indices = @transform_7, window_bounds = array<i64: 128, 4>}, {transform_indices = @transform_8, window_bounds = array<i64: 16, 128>}, {transform_indices = @transform_9, window_bounds = array<i64: 1, 1>}]} {
    %c0_i32 = arith.constant 0 : i32
    %0 = arith.cmpi eq, %arg1, %c0_i32 : i32
    %1 = arith.extui %0 : i1 to i32
    %c0_i32_0 = arith.constant 0 : i32
    %2 = arith.cmpi ne, %1, %c0_i32_0 : i32
    scf.if %2 {
      %cst_19 = arith.constant 0.000000e+00 : f32
      %42 = vector.broadcast %cst_19 : f32 to vector<1x1xf32>
      %c0_20 = arith.constant 0 : index
      %c0_21 = arith.constant 0 : index
      %43 = vector.load %arg12[%c0_20, %c0_21] : memref<1x1xf32, #tpu.memory_space<vmem>>, vector<1x1xf32>
      tpu.vector_store %arg12[%c0_20, %c0_21], %42 {strides = array<i32>} : memref<1x1xf32, #tpu.memory_space<vmem>>, vector<1x1xf32>,
    } else {
    }
    %c0_i32_1 = arith.constant 0 : i32
    %3 = arith.cmpi eq, %arg0, %c0_i32_1 : i32
    %c0_i32_2 = arith.constant 0 : i32
    %4 = arith.cmpi eq, %arg1, %c0_i32_2 : i32
    %5 = arith.andi %3, %4 : i1
    %6 = arith.extui %5 : i1 to i32
    %c0_i32_3 = arith.constant 0 : i32
    %7 = arith.cmpi ne, %6, %c0_i32_3 : i32
    scf.if %7 {
      %c0_19 = arith.constant 0 : index
      %c0_20 = arith.constant 0 : index
      %42 = vector.load %arg2[%c0_19, %c0_20] : memref<8x32xf32, #tpu.memory_space<vmem>>, vector<8x32xf32>
      %c0_21 = arith.constant 0 : index
      %c0_22 = arith.constant 0 : index
      %43 = vector.load %arg3[%c0_21, %c0_22] : memref<8x32xf32, #tpu.memory_space<vmem>>, vector<8x32xf32>
      %c0_23 = arith.constant 0 : index
      %c0_24 = arith.constant 0 : index
      %44 = vector.load %arg4[%c0_23, %c0_24] : memref<8x32xf32, #tpu.memory_space<vmem>>, vector<8x32xf32>
      %c0_25 = arith.constant 0 : index
      %c0_26 = arith.constant 0 : index
      %45 = vector.load %arg5[%c0_25, %c0_26] : memref<8x32xf32, #tpu.memory_space<vmem>>, vector<8x32xf32>
      %c0_27 = arith.constant 0 : index
      %c0_28 = arith.constant 0 : index
      %46 = vector.load %arg6[%c0_27, %c0_28] : memref<8x32xf32, #tpu.memory_space<vmem>>, vector<8x32xf32>
      %47 = arith.mulf %46, %46 : vector<8x32xf32>
      %cst_29 = arith.constant dense<0.000000e+00> : vector<8xf32>
      %48 = vector.multi_reduction <add>, %47, %cst_29 [1] : vector<8x32xf32> to vector<8xf32>
      %49 = vector.shape_cast %48 : vector<8xf32> to vector<8x1xf32>
      %cst_30 = arith.constant 1.000000e-24 : f32
      %50 = vector.broadcast %cst_30 : f32 to vector<8x1xf32>
      %51 = arith.maximumf %49, %50 : vector<8x1xf32>
      %52 = math.rsqrt %51 : vector<8x1xf32>
      %53 = vector.broadcast %52 : vector<8x1xf32> to vector<8x32xf32>
      %54 = arith.mulf %46, %53 : vector<8x32xf32>
      %55 = arith.mulf %54, %42 : vector<8x32xf32>
      %cst_31 = arith.constant dense<0.000000e+00> : vector<8xf32>
      %56 = vector.multi_reduction <add>, %55, %cst_31 [1] : vector<8x32xf32> to vector<8xf32>
      %57 = vector.shape_cast %56 : vector<8xf32> to vector<8x1xf32>
      %58 = vector.broadcast %57 : vector<8x1xf32> to vector<8x32xf32>
      %59 = arith.mulf %58, %54 : vector<8x32xf32>
      %60 = arith.subf %42, %59 : vector<8x32xf32>
      %61 = arith.mulf %54, %43 : vector<8x32xf32>
      %cst_32 = arith.constant dense<0.000000e+00> : vector<8xf32>
      %62 = vector.multi_reduction <add>, %61, %cst_32 [1] : vector<8x32xf32> to vector<8xf32>
      %63 = vector.shape_cast %62 : vector<8xf32> to vector<8x1xf32>
      %64 = vector.broadcast %63 : vector<8x1xf32> to vector<8x32xf32>
      %65 = arith.mulf %64, %54 : vector<8x32xf32>
      %66 = arith.subf %43, %65 : vector<8x32xf32>
      %67 = arith.mulf %54, %44 : vector<8x32xf32>
      %cst_33 = arith.constant dense<0.000000e+00> : vector<8xf32>
      %68 = vector.multi_reduction <add>, %67, %cst_33 [1] : vector<8x32xf32> to vector<8xf32>
      %69 = vector.shape_cast %68 : vector<8xf32> to vector<8x1xf32>
      %70 = vector.broadcast %69 : vector<8x1xf32> to vector<8x32xf32>
      %71 = arith.mulf %70, %54 : vector<8x32xf32>
      %72 = arith.subf %44, %71 : vector<8x32xf32>
      %73 = arith.addf %60, %45 : vector<8x32xf32>
      %74 = arith.subf %73, %66 : vector<8x32xf32>
      %75 = arith.addf %60, %45 : vector<8x32xf32>
      %76 = arith.subf %75, %72 : vector<8x32xf32>
      %77 = arith.mulf %74, %74 : vector<8x32xf32>
      %cst_34 = arith.constant dense<0.000000e+00> : vector<8xf32>
      %78 = vector.multi_reduction <add>, %77, %cst_34 [1] : vector<8x32xf32> to vector<8xf32>
      %79 = vector.shape_cast %78 : vector<8xf32> to vector<8x1xf32>
      %80 = math.sqrt %79 : vector<8x1xf32>
      %81 = arith.mulf %76, %76 : vector<8x32xf32>
      %cst_35 = arith.constant dense<0.000000e+00> : vector<8xf32>
      %82 = vector.multi_reduction <add>, %81, %cst_35 [1] : vector<8x32xf32> to vector<8xf32>
      %83 = vector.shape_cast %82 : vector<8xf32> to vector<8x1xf32>
      %84 = math.sqrt %83 : vector<8x1xf32>
      %85 = arith.subf %80, %84 : vector<8x1xf32>
      %cst_36 = arith.constant 1.000000e+00 : f32
      %86 = vector.broadcast %cst_36 : f32 to vector<8x1xf32>
      %87 = arith.addf %85, %86 : vector<8x1xf32>
      %cst_37 = arith.constant 0.000000e+00 : f32
      %88 = vector.broadcast %cst_37 : f32 to vector<8x1xf32>
      %89 = arith.maximumf %87, %88 : vector<8x1xf32>
      %90 = vector.shape_cast %89 : vector<8x1xf32> to vector<1x8x1xf32>
      %cst_38 = arith.constant dense<0.000000e+00> : vector<1xf32>
      %91 = vector.multi_reduction <add>, %90, %cst_38 [1, 2] : vector<1x8x1xf32> to vector<1xf32>
      %92 = vector.shape_cast %91 : vector<1xf32> to vector<1x1x1xf32>
      %93 = vector.extract %92[0, 0, 0] : f32 from vector<1x1x1xf32>
      %cst_39 = arith.constant 1.250000e-01 : f32
      %94 = arith.mulf %93, %cst_39 : f32
      %c0_40 = arith.constant 0 : index
      %c0_41 = arith.constant 0 : index
      %95 = vector.load %arg7[%c0_40, %c0_41] : memref<16x32xf32, #tpu.memory_space<vmem>>, vector<16x32xf32>
      %c0_42 = arith.constant 0 : index
      %c0_43 = arith.constant 0 : index
      %96 = vector.load %arg8[%c0_42, %c0_43] : memref<16x32xf32, #tpu.memory_space<vmem>>, vector<16x32xf32>
      %97 = arith.mulf %95, %95 : vector<16x32xf32>
      %cst_44 = arith.constant dense<0.000000e+00> : vector<16xf32>
      %98 = vector.multi_reduction <add>, %97, %cst_44 [1] : vector<16x32xf32> to vector<16xf32>
      %99 = vector.shape_cast %98 : vector<16xf32> to vector<16x1xf32>
      %cst_45 = arith.constant 1.000000e-24 : f32
      %100 = vector.broadcast %cst_45 : f32 to vector<16x1xf32>
      %101 = arith.maximumf %99, %100 : vector<16x1xf32>
      %102 = math.rsqrt %101 : vector<16x1xf32>
      %103 = arith.mulf %95, %96 : vector<16x32xf32>
      %cst_46 = arith.constant dense<0.000000e+00> : vector<16xf32>
      %104 = vector.multi_reduction <add>, %103, %cst_46 [1] : vector<16x32xf32> to vector<16xf32>
      %105 = vector.shape_cast %104 : vector<16xf32> to vector<16x1xf32>
      %106 = arith.mulf %105, %102 : vector<16x1xf32>
      %cst_47 = arith.constant 9.99999997E-7 : f32
      %107 = vector.broadcast %cst_47 : f32 to vector<16x1xf32>
      %108 = arith.subf %106, %107 : vector<16x1xf32>
      %cst_48 = arith.constant 0.000000e+00 : f32
      %109 = vector.broadcast %cst_48 : f32 to vector<16x1xf32>
      %110 = arith.maximumf %108, %109 : vector<16x1xf32>
      %111 = vector.shape_cast %110 : vector<16x1xf32> to vector<1x16x1xf32>
      %cst_49 = arith.constant dense<0.000000e+00> : vector<1xf32>
      %112 = vector.multi_reduction <add>, %111, %cst_49 [1, 2] : vector<1x16x1xf32> to vector<1xf32>
      %113 = vector.shape_cast %112 : vector<1xf32> to vector<1x1x1xf32>
      %114 = vector.extract %113[0, 0, 0] : f32 from vector<1x1x1xf32>
      %cst_50 = arith.constant 6.250000e-02 : f32
      %115 = arith.mulf %114, %cst_50 : f32
      %c0_51 = arith.constant 0 : index
      %c0_52 = arith.constant 0 : index
      %116 = vector.load %arg12[%c0_51, %c0_52] : memref<1x1xf32, #tpu.memory_space<vmem>>, vector<1x1xf32>
      %cst_53 = arith.constant 1.000000e+00 : f32
      %117 = arith.mulf %cst_53, %115 : f32
      %118 = arith.addf %94, %117 : f32
      %119 = vector.broadcast %118 : f32 to vector<1x1xf32>
      %120 = arith.addf %116, %119 : vector<1x1xf32>
      %c0_54 = arith.constant 0 : index
      %c0_55 = arith.constant 0 : index
      %121 = vector.load %arg12[%c0_54, %c0_55] : memref<1x1xf32, #tpu.memory_space<vmem>>, vector<1x1xf32>
      tpu.vector_store %arg12[%c0_54, %c0_55], %120 {strides = array<i32>} : memref<1x1xf32, #tpu.memory_space<vmem>>, vector<1x1xf32>,
    } else {
    }
    %c1_i32 = arith.constant 1 : i32
    %8 = arith.muli %arg0, %c1_i32 : i32
    %9 = arith.addi %8, %arg1 : i32
    %c16_i32 = arith.constant 16 : i32
    %10 = arith.muli %9, %c16_i32 : i32
    %11 = tpu.iota {dimensions = array<i32: 0>} : vector<16x1xi32>
    %12 = vector.broadcast %10 : i32 to vector<16x1xi32>
    %13 = arith.addi %12, %11 : vector<16x1xi32>
    %c16_i32_4 = arith.constant 16 : i32
    %14 = vector.broadcast %c16_i32_4 : i32 to vector<16x1xi32>
    %15 = arith.cmpi slt, %13, %14 : vector<16x1xi32>
    %c0 = arith.constant 0 : index
    %c0_5 = arith.constant 0 : index
    %16 = vector.load %arg10[%c0, %c0_5] : memref<16x128xf32, #tpu.memory_space<vmem>>, vector<16x128xf32>
    %cst = arith.constant 0.000000e+00 : f32
    %17 = vector.shape_cast %15 : vector<16x1xi1> to vector<16x1xi1>
    %18 = vector.broadcast %17 : vector<16x1xi1> to vector<16x128xi1>
    %19 = vector.broadcast %cst : f32 to vector<16x128xf32>
    %20 = arith.select %18, %16, %19 : vector<16x128xi1>, vector<16x128xf32>
    %21 = arith.mulf %20, %20 : vector<16x128xf32>
    %22 = arith.truncf %21 : vector<16x128xf32> to vector<16x128xbf16>
    %c0_6 = arith.constant 0 : index
    %c0_7 = arith.constant 0 : index
    %23 = vector.load %arg9[%c0_6, %c0_7] : memref<128x4xbf16, #tpu.memory_space<vmem>>, vector<128x4xbf16>
    %cst_8 = arith.constant dense<0.000000e+00> : vector<16x4xf32>
    %24 = tpu.matmul %22, %23, %cst_8 {dimension_numbers = #tpu.dot_dimension_numbers<[1], [0], [0], [1], [0, 0, 1, 1], [], []>} : vector<16x128xbf16>, vector<128x4xbf16>, vector<16x4xf32> -> vector<16x4xf32>
    %25 = math.sqrt %24 : vector<16x4xf32>
    %cst_9 = arith.constant 1.000000e+00 : f32
    %26 = vector.broadcast %cst_9 : f32 to vector<16x4xf32>
    %27 = arith.subf %25, %26 : vector<16x4xf32>
    %cst_10 = arith.constant 0.000000e+00 : f32
    %28 = vector.broadcast %cst_10 : f32 to vector<16x4xf32>
    %29 = arith.maximumf %27, %28 : vector<16x4xf32>
    %30 = vector.shape_cast %29 : vector<16x4xf32> to vector<1x16x4xf32>
    %cst_11 = arith.constant dense<0.000000e+00> : vector<1xf32>
    %31 = vector.multi_reduction <add>, %30, %cst_11 [1, 2] : vector<1x16x4xf32> to vector<1xf32>
    %32 = vector.shape_cast %31 : vector<1xf32> to vector<1x1x1xf32>
    %33 = vector.extract %32[0, 0, 0] : f32 from vector<1x1x1xf32>
    %c0_12 = arith.constant 0 : index
    %c0_13 = arith.constant 0 : index
    %34 = vector.load %arg12[%c0_12, %c0_13] : memref<1x1xf32, #tpu.memory_space<vmem>>, vector<1x1xf32>
    %cst_14 = arith.constant 1.562500e-02 : f32
    %35 = arith.mulf %cst_14, %33 : f32
    %36 = vector.broadcast %35 : f32 to vector<1x1xf32>
    %37 = arith.addf %34, %36 : vector<1x1xf32>
    %c0_15 = arith.constant 0 : index
    %c0_16 = arith.constant 0 : index
    %38 = vector.load %arg12[%c0_15, %c0_16] : memref<1x1xf32, #tpu.memory_space<vmem>>, vector<1x1xf32>
    tpu.vector_store %arg12[%c0_15, %c0_16], %37 {strides = array<i32>} : memref<1x1xf32, #tpu.memory_space<vmem>>, vector<1x1xf32>,
    %c0_i32_17 = arith.constant 0 : i32
    %39 = arith.cmpi eq, %arg1, %c0_i32_17 : i32
    %40 = arith.extui %39 : i1 to i32
    %c0_i32_18 = arith.constant 0 : i32
    %41 = arith.cmpi ne, %40, %c0_i32_18 : i32
    scf.if %41 {
      %c0_19 = arith.constant 0 : index
      %c0_20 = arith.constant 0 : index
      %42 = vector.load %arg12[%c0_19, %c0_20] : memref<1x1xf32, #tpu.memory_space<vmem>>, vector<1x1xf32>
      %43 = vector.shape_cast %42 : vector<1x1xf32> to vector<1x1x1xf32>
      %cst_21 = arith.constant dense<0.000000e+00> : vector<1xf32>
      %44 = vector.multi_reduction <add>, %43, %cst_21 [1, 2] : vector<1x1x1xf32> to vector<1xf32>
      %45 = vector.shape_cast %44 : vector<1xf32> to vector<1x1x1xf32>
      %46 = vector.extract %45[0, 0, 0] : f32 from vector<1x1x1xf32>
      %c0_22 = arith.constant 0 : index
      %c0_23 = arith.constant 0 : index
      %47 = memref.load %arg11[%c0_22, %c0_23] : memref<1x1xf32, #tpu.memory_space<smem>>
      memref.store %46, %arg11[%c0_22, %c0_23] : memref<1x1xf32, #tpu.memory_space<smem>>
    } else {
    }
    return
  }
  func.func @transform_0(%arg0: i32, %arg1: i32) -> (i32, i32) {
    %c0_i32 = arith.constant 0 : i32
    %c0_i32_0 = arith.constant 0 : i32
    %c0_i32_1 = arith.constant 0 : i32
    return %c0_i32, %c0_i32_0 : i32, i32
  }
  func.func @transform_1(%arg0: i32, %arg1: i32) -> (i32, i32) {
    %c0_i32 = arith.constant 0 : i32
    %c0_i32_0 = arith.constant 0 : i32
    %c0_i32_1 = arith.constant 0 : i32
    return %c0_i32, %c0_i32_0 : i32, i32
  }
  func.func @transform_2(%arg0: i32, %arg1: i32) -> (i32, i32) {
    %c0_i32 = arith.constant 0 : i32
    %c0_i32_0 = arith.constant 0 : i32
    %c0_i32_1 = arith.constant 0 : i32
    return %c0_i32, %c0_i32_0 : i32, i32
  }
  func.func @transform_3(%arg0: i32, %arg1: i32) -> (i32, i32) {
    %c0_i32 = arith.constant 0 : i32
    %c0_i32_0 = arith.constant 0 : i32
    %c0_i32_1 = arith.constant 0 : i32
    return %c0_i32, %c0_i32_0 : i32, i32
  }
  func.func @transform_4(%arg0: i32, %arg1: i32) -> (i32, i32) {
    %c0_i32 = arith.constant 0 : i32
    %c0_i32_0 = arith.constant 0 : i32
    %c0_i32_1 = arith.constant 0 : i32
    return %c0_i32, %c0_i32_0 : i32, i32
  }
  func.func @transform_5(%arg0: i32, %arg1: i32) -> (i32, i32) {
    %c0_i32 = arith.constant 0 : i32
    %c0_i32_0 = arith.constant 0 : i32
    %c0_i32_1 = arith.constant 0 : i32
    return %c0_i32, %c0_i32_0 : i32, i32
  }
  func.func @transform_6(%arg0: i32, %arg1: i32) -> (i32, i32) {
    %c0_i32 = arith.constant 0 : i32
    %c0_i32_0 = arith.constant 0 : i32
    %c0_i32_1 = arith.constant 0 : i32
    return %c0_i32, %c0_i32_0 : i32, i32
  }
  func.func @transform_7(%arg0: i32, %arg1: i32) -> (i32, i32) {
    %c0_i32 = arith.constant 0 : i32
    %c0_i32_0 = arith.constant 0 : i32
    %c0_i32_1 = arith.constant 0 : i32
    return %c0_i32, %c0_i32_0 : i32, i32
  }
  func.func @transform_8(%arg0: i32, %arg1: i32) -> (i32, i32) {
    %c1_i32 = arith.constant 1 : i32
    %0 = arith.muli %arg0, %c1_i32 : i32
    %1 = arith.addi %0, %arg1 : i32
    %c0_i32 = arith.constant 0 : i32
    %2 = arith.minsi %1, %c0_i32 : i32
    %c0_i32_0 = arith.constant 0 : i32
    %c0_i32_1 = arith.constant 0 : i32
    return %2, %c0_i32_0 : i32, i32
  }
  func.func @transform_9(%arg0: i32, %arg1: i32) -> (i32, i32) {
    %c0_i32 = arith.constant 0 : i32
    %c0_i32_0 = arith.constant 0 : i32
    return %arg0, %c0_i32 : i32, i32
  }
}

</mosaic_0001>

<bundles_post_ra>
// kernel: transh_forward.1
= control target key start
LH: loop header
LB: loop body
LE: loop exit
PB: predicated region body
PF: predicated region fallthrough
CT: control target
= control target key end

     0   :  { %vm83_vm0 = vcmask 261120   ;;  %s623_s0 = inlined_call_operand.vmem [shape: f32[8,32], index: 0, kind: input, shape index: {}]   ;;  %s624_s1 = inlined_call_operand.vmem [shape: f32[8,32], index: 1, kind: input, shape index: {}]   ;;  %s625_s2 = inlined_call_operand.vmem [shape: f32[8,32], index: 2, kind: input, shape index: {}]   ;;  %s626_s3 = inlined_call_operand.vmem [shape: f32[8,32], index: 3, kind: input, shape index: {}]   ;;  %s627_s4 = inlined_call_operand.vmem [shape: f32[8,32], index: 4, kind: input, shape index: {}]   ;;  %s628_s5 = inlined_call_operand.vmem [shape: f32[16,32], index: 5, kind: input, shape index: {}]   ;;  %s629_s6 = inlined_call_operand.vmem [shape: f32[16,32], index: 6, kind: input, shape index: {}]   ;;  %s630_s7 = inlined_call_operand.vmem [shape: bf16[128,4], index: 7, kind: input, shape index: {}]   ;;  %s631_s8 = inlined_call_operand.vmem [shape: f32[16,128], index: 8, kind: input, shape index: {}]   ;;  %s632_s9 = inlined_call_operand.hbm [shape: f32[1,1], index: 9, kind: output, shape index: {}]  }
   0x1   :  { %v81_v0 = vld [vmem:[%s627_s4] sm:$0xff] }
   0x2   :  { %v82_v1 = vmul.f32 %v81_v0, %v81_v0 }
   0x4   :  { %v84_v2 = vsel %vm83_vm0, %v82_v1, 0.0 }
   0x5   :  { %85 = vadd.xlane.f32.xlu0 %v84_v2 }
   0x6   :  { %14 = vsyncpa [#allocation4], 0  ;;  %v439_v3 = vld [vmem:[%s630_s7 + $0x38] sm:$0xff]   ;;  %v471_v4 = vmov 0.0   ;;  %vm472_vm1 = vmmov 0   ;;  %v440_v5 = vld [vmem:[%s630_s7 + $0x30] sm:$0xff]  }
   0x7   :  { %408 = vmatprep.subr.bf16.mxu0 %v471_v4  ;;  %424 = vmatprep.mubr.msk.bf16.mxu0 %vm472_vm1, %v471_v4  ;;  %v441_v6 = vld [vmem:[%s630_s7 + $0x28] sm:$0xff]   ;;  %v442_v7 = vld [vmem:[%s630_s7 + $0x20] sm:$0xff]   ;;  %v443_v8 = vld [vmem:[%s630_s7 + $0x18] sm:$0xff]   ;;  %vm341_vm10 = vcmask 31744   ;;  %vm136_vm11 = vcmask 7168   ;;  %vm70_vm12 = vcmask 0  }
   0x8   :  { %409 = vmatpush3.bf16.msra.mxu0 %v439_v3  ;;  %v444_v9 = vld [vmem:[%s630_s7 + $0x10] sm:$0xff]   ;;  %v445_v10 = vld [vmem:[%s630_s7 + $0x8] sm:$0xff]   ;;  %v207_v11 = vld [vmem:[%s631_s8] sm:$0xff]  ;;  %71 = vst.msk [vmem:[#allocation2] sm:$0x1] %vm70_vm12, %v471_v4  ;;  %s473_s24 = smov [#allocation3]  }
   0x9   :  { %410 = vmatprep.subr.bf16.mxu0 %v471_v4  ;;  %v208_v12 = vld [vmem:[%s631_s8 + $0x8] sm:$0xff]  ;;  %v215_v13 = vmul.f32 %v207_v11, %v207_v11  ;;  %v446_v15 = vld [vmem:[%s630_s7] sm:$0xff]  }
   0xa   :  { %v216_v14 = vmul.f32 %v208_v12, %v208_v12  ;;  %v78_v20 = vld [vmem:[%s624_s1] sm:$0xff]  ;;  %v149_v47 = vld [vmem:[%s628_s5 + $0x8] sm:$0xff] }
   0xb   :  { %v77_v21 = vld [vmem:[%s623_s0] sm:$0xff]  ;;  %v153_v54 = vmul.f32 %v149_v47, %v149_v47  ;;  %v151_v55 = vld [vmem:[%s629_s6 + $0x8] sm:$0xff] }
   0xc   :  { %411 = vmatpush3.bf16.msra.mxu0 %v440_v5  ;;  %v217_v16 = vpack.c.bf16 %v216_v14, %v215_v13  ;;  %v79_v23 = vld [vmem:[%s625_s2] sm:$0xff]  ;;  %v165_v60 = vmul.f32 %v151_v55, %v149_v47 }
   0xd   :  { %412 = vmatprep.subr.bf16.mxu0 %v471_v4  ;;  %v80_v38 = vld [vmem:[%s626_s3] sm:$0xff]  ;;  %v157_v59 = vsel %vm83_vm0, %v153_v54, 0.0 }
   0xe   :  { %v148_v44 = vld [vmem:[%s628_s5] sm:$0xff]  ;;  %v169_v62 = vsel %vm83_vm0, %v165_v60, 0.0 }
   0xf   :  { %v152_v50 = vmul.f32 %v148_v44, %v148_v44  ;;  %v150_v51 = vld [vmem:[%s629_s6] sm:$0xff] }
  0x10   :  { %413 = vmatpush3.bf16.msra.mxu0 %v441_v6  ;;  %v164_v58 = vmul.f32 %v150_v51, %v148_v44 }
  0x11   :  { %414 = vmatprep.subr.bf16.mxu0 %v471_v4  ;;  %v154_v57 = vsel %vm83_vm0, %v152_v50, 0.0 }
  0x12   :  { %v166_v61 = vsel %vm83_vm0, %v164_v58, 0.0 }
  0x14   :  { %415 = vmatpush3.bf16.msra.mxu0 %v442_v7 }
  0x15   :  { %416 = vmatprep.subr.bf16.mxu0 %v471_v4 }
  0x18   :  { %417 = vmatpush3.bf16.msra.mxu0 %v443_v8 }
  0x19   :  { %418 = vmatprep.subr.bf16.mxu0 %v471_v4 }
  0x1c   :  { %419 = vmatpush3.bf16.msra.mxu0 %v444_v9 }
  0x1d   :  { %420 = vmatprep.subr.bf16.mxu0 %v471_v4 }
  0x20   :  { %421 = vmatpush3.bf16.msra.mxu0 %v445_v10 }
  0x21   :  { %422 = vmatprep.subr.bf16.mxu0 %v471_v4 }
  0x24   :  { %423 = vmatpush3.bf16.msra.mxu0 %v446_v15 }
  0x27   :  { %425 = vmatmul.mubr.bf16.vlgmr.msra.gmra.mxu0 %v217_v16 }
  0x8e   :  { %v86_v17 = vpop.xlane.xlu0 %85 }
  0x8f   :  { %v87_v18 = vmax.f32 %v86_v17, 1e-24 }
  0x91   :  { %447 = vrsqrt.f32 %v87_v18 }
  0x9e   :  { %v448_v19 = vpop.eup %447 }
  0x9f   :  { %v89_v22 = vmul.f32 %v448_v19, %v81_v0 }
  0xa1   :  { %v96_v24 = vmul.f32 %v89_v22, %v78_v20  ;;  %v90_v25 = vmul.f32 %v89_v22, %v77_v21  ;;  %v102_v28 = vmul.f32 %v89_v22, %v79_v23 }
  0xa3   :  { %v97_v26 = vsel %vm83_vm0, %v96_v24, 0.0  ;;  %v91_v27 = vsel %vm83_vm0, %v90_v25, 0.0  ;;  %v103_v29 = vsel %vm83_vm0, %v102_v28, 0.0 }
  0xa4   :  { %98 = vadd.xlane.f32.xlu1 %v97_v26  ;;  %92 = vadd.xlane.f32.xlu0 %v91_v27 }
  0xa8   :  { %104 = vadd.xlane.f32.xlu1 %v103_v29 }
  0xe7   :  { %v579_v30 = vpop.f32.mrf.mxu0 }
  0xe8   :  { %449 = vrsqrt.f32 %v579_v30  ;;  %vm325_vm2 = vcmp.eq.f32.partialorder %v579_v30, inf  ;;  %v328_v10 = vand.u32 2147483648, %v579_v30  ;;  %vm327_vm4 = vcmp.eq.f32.partialorder %v579_v30, 0.0 }
  0xe9   :  { %v426_v31 = vpop.f32.mrf.mxu0 }
  0xeb   :  { %v581_v32 = vpop.f32.mrf.mxu0 }
  0xec   :  { %451 = vrsqrt.f32 %v581_v32  ;;  %vm332_vm3 = vcmp.eq.f32.partialorder %v581_v32, inf  ;;  %v335_v12 = vand.u32 2147483648, %v581_v32  ;;  %vm334_vm5 = vcmp.eq.f32.partialorder %v581_v32, 0.0 }
  0xed   :  { %v427_v33 = vpop.f32.mrf.mxu0 }
  0xf5   :  { %v450_v1 = vpop.eup %449 }
  0xf6   :  { %v324_v7 = vmul.f32 %v450_v1, %v579_v30 }
  0xf8   :  { %v326_v11 = vsel %vm325_vm2, %v579_v30, %v324_v7  ;;  %v191_v7 = vld [vmem:[#allocation2] sm:$0x1] }
  0xf9   :  { %v452_v3 = vpop.eup %451  ;;  %v329_v15 = vsel %vm327_vm4, %v328_v10, %v326_v11 }
  0xfa   :  { %v331_v9 = vmul.f32 %v452_v3, %v581_v32 }
  0xfc   :  { %v333_v13 = vsel %vm332_vm3, %v581_v32, %v331_v9 }
  0xfd   :  { %v336_v17 = vsel %vm334_vm5, %v335_v12, %v333_v13 }
  0xfe   :  { %v398_v25 = vadd.f32 -1.0, %v336_v17 }
 0x12d   :  { %v99_v34 = vpop.xlane.xlu1 %98  ;;  %v93_v35 = vpop.xlane.xlu0 %92 }
 0x12e   :  { %v100_v36 = vmul.f32 %v99_v34, %v89_v22  ;;  %v94_v37 = vmul.f32 %v93_v35, %v89_v22  ;;  %v340_v35 = vmax.f32 %v398_v25, 0.0 }
 0x130   :  { %v95_v39 = vsub.f32 %v77_v21, %v94_v37  ;;  %v101_v41 = vsub.f32 %v78_v20, %v100_v36  ;;  %v397_v21 = vadd.f32 -1.0, %v329_v15 }
 0x131   :  { %v105_v40 = vpop.xlane.xlu1 %104 }
 0x132   :  { %v108_v42 = vadd.f32 %v95_v39, %v80_v38  ;;  %v106_v43 = vmul.f32 %v105_v40, %v89_v22  ;;  %v339_v34 = vmax.f32 %v397_v21, 0.0 }
 0x134   :  { %v107_v45 = vsub.f32 %v79_v23, %v106_v43  ;;  %v109_v46 = vsub.f32 %v108_v42, %v101_v41 }
 0x136   :  { %v111_v48 = vmul.f32 %v109_v46, %v109_v46  ;;  %v110_v49 = vsub.f32 %v108_v42, %v107_v45  ;;  %v342_v42 = vsel %vm341_vm10, %v339_v34, 0.0  ;;  %v343_v46 = vsel %vm341_vm10, %v340_v35, 0.0 }
 0x138   :  { %v112_v52 = vsel %vm83_vm0, %v111_v48, 0.0  ;;  %v122_v53 = vmul.f32 %v110_v49, %v110_v49  ;;  %v344_v49 = vadd.f32 %v343_v46, %v342_v42 }
 0x139   :  { %113 = vadd.xlane.f32.xlu0 %v112_v52 }
 0x13a   :  { %v123_v56 = vsel %vm83_vm0, %v122_v53, 0.0 }
 0x13b   :  { %124 = vadd.xlane.f32.xlu1 %v123_v56 }
 0x13d   :  { %155 = vadd.xlane.f32.xlu0 %v154_v57 }
 0x13f   :  { %158 = vadd.xlane.f32.xlu1 %v157_v59 }
 0x141   :  { %167 = vadd.xlane.f32.xlu0 %v166_v61 }
 0x143   :  { %170 = vadd.xlane.f32.xlu1 %v169_v62 }
 0x1c2   :  { %v114_v63 = vpop.xlane.xlu0 %113 }
 0x1c3   :  { %453 = vrsqrt.f32 %v114_v63  ;;  %vm117_vm6 = vcmp.eq.f32.partialorder %v114_v63, inf  ;;  %v120_v23 = vand.u32 2147483648, %v114_v63  ;;  %vm119_vm8 = vcmp.eq.f32.partialorder %v114_v63, 0.0 }
 0x1c4   :  { %v125_v0 = vpop.xlane.xlu1 %124 }
 0x1c5   :  { %455 = vrsqrt.f32 %v125_v0  ;;  %vm128_vm7 = vcmp.eq.f32.partialorder %v125_v0, inf  ;;  %v131_v24 = vand.u32 2147483648, %v125_v0  ;;  %vm130_vm9 = vcmp.eq.f32.partialorder %v125_v0, 0.0 }
 0x1c6   :  { %v156_v2 = vpop.xlane.xlu0 %155 }
 0x1c7   :  { %v160_v5 = vmax.f32 %v156_v2, 1e-24 }
 0x1c8   :  { %v159_v6 = vpop.xlane.xlu1 %158 }
 0x1c9   :  { %v161_v8 = vmax.f32 %v159_v6, 1e-24  ;;  %457 = vrsqrt.f32 %v160_v5 }
 0x1ca   :  { %v168_v22 = vpop.xlane.xlu0 %167 }
 0x1cb   :  { %459 = vrsqrt.f32 %v161_v8 }
 0x1cc   :  { %v171_v28 = vpop.xlane.xlu1 %170 }
 0x1d0   :  { %v454_v14 = vpop.eup %453 }
 0x1d1   :  { %v116_v16 = vmul.f32 %v454_v14, %v114_v63 }
 0x1d2   :  { %v456_v18 = vpop.eup %455 }
 0x1d3   :  { %v118_v19 = vsel %vm117_vm6, %v114_v63, %v116_v16  ;;  %v127_v20 = vmul.f32 %v456_v18, %v125_v0 }
 0x1d4   :  { %v121_v29 = vsel %vm119_vm8, %v120_v23, %v118_v19 }
 0x1d5   :  { %v129_v26 = vsel %vm128_vm7, %v125_v0, %v127_v20 }
 0x1d6   :  { %v458_v27 = vpop.eup %457  ;;  %v132_v30 = vsel %vm130_vm9, %v131_v24, %v129_v26 }
 0x1d7   :  { %v172_v31 = vmul.f32 %v458_v27, %v168_v22  ;;  %v133_v32 = vsub.f32 %v121_v29, %v132_v30 }
 0x1d8   :  { %v460_v33 = vpop.eup %459 }
 0x1d9   :  { %v173_v36 = vmul.f32 %v460_v33, %v171_v28  ;;  %v387_v37 = vadd.f32 -1e-06, %v172_v31  ;;  %v134_v38 = vadd.f32 1.0, %v133_v32 }
 0x1db   :  { %v388_v39 = vadd.f32 -1e-06, %v173_v36  ;;  %v176_v40 = vmax.f32 %v387_v37, 0.0  ;;  %v135_v41 = vmax.f32 %v134_v38, 0.0 }
 0x1dd   :  { %v177_v43 = vmax.f32 %v388_v39, 0.0  ;;  %v137_v44 = vsel %vm136_vm11, %v135_v41, 0.0  ;;  %v178_v45 = vsel %vm136_vm11, %v176_v40, 0.0 }
 0x1de   :  { %138 = vadd.xlane.f32.xlu0 %v137_v44 }
 0x1df   :  { %v179_v47 = vsel %vm136_vm11, %v177_v43, 0.0 }
 0x1e0   :  { %v180_v48 = vadd.f32 %v179_v47, %v178_v45 }
 0x1e2   :  { %181 = vadd.xlane.f32.xlu1 %v180_v48  ;;  %345 = vadd.xlane.f32.xlu0 %v344_v49 }
 0x267   :  { %v139_v50 = vpop.xlane.xlu0 %138 }
 0x268   :  { %v140_v51 = vrot.slane %v139_v50, 4 }
 0x26a   :  { %v141_v52 = vadd.f32 %v140_v51, %v139_v50 }
 0x26b   :  { %v182_v53 = vpop.xlane.xlu1 %181  ;;  %v346_v54 = vpop.xlane.xlu0 %345 }
 0x26c   :  { %v142_v55 = vrot.slane %v141_v52, 2  ;;  %v183_v56 = vrot.slane %v182_v53, 4  ;;  %v347_v57 = vrot.slane %v346_v54, 4 }
 0x26e   :  { %v184_v58 = vadd.f32 %v183_v56, %v182_v53  ;;  %v348_v59 = vadd.f32 %v347_v57, %v346_v54  ;;  %v143_v60 = vadd.f32 %v142_v55, %v141_v52 }
 0x270   :  { %v185_v61 = vrot.slane %v184_v58, 2  ;;  %v349_v62 = vrot.slane %v348_v59, 2  ;;  %v144_v63 = vrot.slane %v143_v60, 1 }
 0x272   :  { %v186_v0 = vadd.f32 %v185_v61, %v184_v58  ;;  %v350_v1 = vadd.f32 %v349_v62, %v348_v59  ;;  %v145_v2 = vadd.f32 %v144_v63, %v143_v60 }
 0x274   :  { %428 = vpush %v145_v2  ;;  %v187_v3 = vrot.slane %v186_v0, 1  ;;  %v351_v4 = vrot.slane %v350_v1, 1 }
 0x276   :  { %v188_v5 = vadd.f32 %v187_v3, %v186_v0  ;;  %v352_v6 = vadd.f32 %v351_v4, %v350_v1 }
 0x278   :  { %430 = vpush %v188_v5 }
 0x279   :  { %432 = vpush %v352_v6 }
 0x2a5   :  { %s429_s5 = spop %428 }
 0x2a6   :  { %s147_s6 = smul.f32 0.125, %s429_s5 }
 0x2a9   :  { %s431_s18 = spop %430 }
 0x2aa   :  { %s190_s19 = smul.f32 0.0625, %s431_s18  ;;  %s433_s21 = spop %432 }
 0x2ab   :  { %s355_s22 = smul.f32 0.015625, %s433_s21 }
 0x2ac   :  { %s192_s20 = sadd.f32 %s190_s19, %s147_s6 }
 0x2ad   :  { %v356_v11 = vstv %s355_s22 }
 0x2ae   :  { %v193_v8 = vstv %s192_s20 }
 0x2af   :  { %v194_v9 = vadd.f32 %v193_v8, %v191_v7 }
 0x2b1   :  { %196 = vst.msk [vmem:[#allocation2] sm:$0x1] %vm70_vm12, %v194_v9 }
 0x2b8   :  { %v354_v10 = vld [vmem:[#allocation2] sm:$0x1] }
 0x2b9   :  { %v357_v12 = vadd.f32 %v356_v11, %v354_v10 }
 0x2bb   :  { %359 = vst.msk [vmem:[#allocation2] sm:$0x1] %vm70_vm12, %v357_v12 }
 0x2c2   :  { %v363_v13 = vld [vmem:[#allocation2] sm:$0x1] }
 0x2c3   :  { %434 = vpush %v363_v13 }
 0x2f4   :  { %s435_s23 = spop %434 }
 0x2f5   :  { %367 = sst [smem:[#allocation3]] %s435_s23 }
 0x2f6   :  { %375 = dma.smem_to_hbm %s473_s24, 16, %s632_s9, [#allocation4]  }
 0x2f7   :  { %469 = dma.done.wait [#allocation4], 16  }
 0x2f8   :  { %470 = vsyncadd [#allocation4], 4294967280 }
 0x2f9   :  { %379 = sfence }
 0x2fa   :  { %380 = vsyncpa [#allocation4], 1 }

</bundles_post_ra>
